<compile_context>
chip_gen: v7x
topology: tpu7x:2x2x1
jax: 0.10.0
libtpu: 0.0.40
codegen_flags: <defaults>
</compile_context>

<pallas_src>
import functools

import jax
import jax.numpy as jnp
from jax.experimental import pallas as pl
from jax.experimental.pallas import tpu as pltpu


# ---------------------------------------------------------------------------
# Kernels
# ---------------------------------------------------------------------------

def _pooled_from_aux(aux_ref, pooled_ref, V):
    """pooled[b] = max_v aux[b*V + v]  (rows are batch-major).

    Uses V sublane-strided reads (stride=V) + elementwise jnp.maximum so the
    view reduction stays on the VPU instead of a reshape + cross-sublane
    XLU reduction.
    """
    rows = pooled_ref.shape[0]                       # = TM // V
    pooled = aux_ref[pl.ds(0, rows, stride=V), :]
    for v in range(1, V):
        pooled = jnp.maximum(pooled, aux_ref[pl.ds(v, rows, stride=V), :])
    pooled_ref[...] = pooled.astype(pooled_ref.dtype)


def _mv_max_kernel_resident(x_ref, w_ref, b_ref, pooled_ref, aux_ref, *, V):
    # Fast path: full (K, F) weight resident in VMEM, single dot per row tile.
    # x_ref: (TM, K) bf16, w_ref: (K, F) bf16, b_ref: (1, F) f32
    # aux_ref: (TM, F) f32, pooled_ref: (TM//V, F) f32
    h = jnp.dot(x_ref[...], w_ref[...], preferred_element_type=jnp.float32)
    h = jnp.maximum(h + b_ref[...], 0.0)
    aux_ref[...] = h.astype(aux_ref.dtype)
    _pooled_from_aux(aux_ref, pooled_ref, V)


def _mv_max_kernel_ktiled(x_ref, w_ref, b_ref, pooled_ref, aux_ref, *, V):
    # Large-K path: accumulate the K reduction directly into the resident f32
    # aux output block (no separate scratch), epilogue on the last K step.
    k = pl.program_id(1)

    @pl.when(k == 0)
    def _():
        aux_ref[...] = jnp.zeros_like(aux_ref)

    aux_ref[...] += jnp.dot(x_ref[...], w_ref[...],
                            preferred_element_type=jnp.float32)

    @pl.when(k == pl.num_programs(1) - 1)
    def _():
        aux_ref[...] = jnp.maximum(aux_ref[...] + b_ref[...], 0.0)
        _pooled_from_aux(aux_ref, pooled_ref, V)


# ---------------------------------------------------------------------------
# Tile selection
# ---------------------------------------------------------------------------

def _default_tm_cap():
    # v5e MXU is 4x128x128 -> 128-row LHS tiles already fill it; v6e/v7x MXUs
    # are 2x256x256 -> use 256-row tiles there.
    try:
        kind = jax.devices()[0].device_kind.lower()
    except Exception:
        return 256
    return 128 if "v5" in kind else 256


def _legal_tm(tm, M, V, B, sub):
    if tm % V or M % tm:
        return False
    if tm % sub and tm != M:                 # x block sublane (16 for bf16)
        return False
    if (tm // V) % 8 and tm // V != B:       # pooled f32 block sublane
        return False
    return True


def _choose_tm(M, V, B, cap, *, sub=16):
    """Largest legal row tile <= cap; prefer >=2 row tiles (v7x megacore)."""
    cands = [tm for tm in range(V, M + 1, V) if _legal_tm(tm, M, V, B, sub)]
    small = [tm for tm in cands if tm <= cap]
    tm = max(small) if small else M          # TM = M is always legal
    if M // tm == 1:
        # A single row tile serializes onto one TensorCore on v7x; split if we
        # can keep tiles >= 128 rows.
        multi = [t for t in cands if M // t >= 2 and t >= 128]
        if multi:
            tm = max(multi)
    # NOTE: for awkward M the fallback TM = M can be large; padding M would be
    # more robust, but realistic B*V stays small.
    return tm


def _choose_tk(K, cap):
    """Largest K tile <= cap that divides K and is a multiple of 128."""
    best = None
    for tk in range(128, min(K, cap) + 1, 128):
        if K % tk == 0:
            best = tk
    return best if best is not None else K   # TK = K is always legal


def _vmem_limit_bytes(in_tile_bytes, out_tile_bytes):
    # Double-buffered inputs/outputs, 2x headroom for Mosaic internals,
    # clamped so we never request all of v7x's 64 MiB VMEM.
    est = 2 * (in_tile_bytes + out_tile_bytes)
    return int(min(max(2 * est, 16 * 1024 * 1024), 48 * 1024 * 1024))


# ---------------------------------------------------------------------------
# Wrapper
# ---------------------------------------------------------------------------

def view_max_aggregate(mvimages, weight, bias, *, tm_cap=None, tk_cap=2048,
                       weight_resident_bytes=4 * 1024 * 1024,
                       compute_dtype=jnp.bfloat16):
    """mvimages: (B, V, C, D, H, W) f32; weight: (K, F); bias: (F,).

    Returns (pooled (B, F) f32 [squeezed], aux (B, V, F) f32).
    """
    B, V, C, D, H, W = mvimages.shape
    K = C * D * H * W
    F = weight.shape[1]
    M = B * V

    if tm_cap is None:
        tm_cap = _default_tm_cap()

    isz = jnp.dtype(compute_dtype).itemsize
    sub = 16 if isz == 2 else 8

    # Glue: flatten per-view volume (NCDHW-major, matches torch.flatten) and
    # collapse (B, V) -> M batch-major rows (layout-preserving reshape), then
    # cast MXU operands to bf16.  In production the cast fuses upstream / the
    # inputs are already bf16; accumulation and outputs remain f32.
    x = mvimages.reshape(M, K).astype(compute_dtype)
    w = weight.astype(compute_dtype)
    b2 = bias.reshape(1, F).astype(jnp.float32)

    TM = _choose_tm(M, V, B, tm_cap, sub=sub)

    out_shape = (
        jax.ShapeDtypeStruct((B, F), jnp.float32),    # pooled_view
        jax.ShapeDtypeStruct((M, F), jnp.float32),    # aux (collapsed rows)
    )
    out_tile_bytes = TM * F * 4 + (TM // V) * F * 4

    weight_bytes = K * F * isz
    if weight_bytes <= weight_resident_bytes:
        # ---- Fast path: weight fully resident, no K reduction axis. ----
        in_tile_bytes = TM * K * isz + weight_bytes + F * 4
        kernel = functools.partial(_mv_max_kernel_resident, V=V)
        pooled, aux = pl.pallas_call(
            kernel,
            out_shape=out_shape,
            grid=(M // TM,),
            in_specs=[
                pl.BlockSpec((TM, K), lambda i: (i, 0)),     # x row tile
                pl.BlockSpec((K, F), lambda i: (0, 0)),      # resident weight
                pl.BlockSpec((1, F), lambda i: (0, 0)),      # bias
            ],
            out_specs=(
                pl.BlockSpec((TM // V, F), lambda i: (i, 0)),  # pooled
                pl.BlockSpec((TM, F), lambda i: (i, 0)),       # aux
            ),
            compiler_params=pltpu.CompilerParams(
                dimension_semantics=("parallel",),
                vmem_limit_bytes=_vmem_limit_bytes(in_tile_bytes,
                                                   out_tile_bytes),
            ),
        )(x, w, b2)
    else:
        # ---- Large-K path: K-tiled reduction into the resident aux block. ----
        TK = _choose_tk(K, tk_cap)
        in_tile_bytes = TM * TK * isz + TK * F * isz + F * 4
        kernel = functools.partial(_mv_max_kernel_ktiled, V=V)
        pooled, aux = pl.pallas_call(
            kernel,
            out_shape=out_shape,
            grid=(M // TM, K // TK),
            in_specs=[
                pl.BlockSpec((TM, TK), lambda i, k: (i, k)),   # x row/K tile
                pl.BlockSpec((TK, F), lambda i, k: (k, 0)),    # weight K tile
                pl.BlockSpec((1, F), lambda i, k: (0, 0)),     # bias
            ],
            out_specs=(
                pl.BlockSpec((TM // V, F), lambda i, k: (i, 0)),  # pooled
                pl.BlockSpec((TM, F), lambda i, k: (i, 0)),       # aux
            ),
            compiler_params=pltpu.CompilerParams(
                dimension_semantics=("parallel", "arbitrary"),
                vmem_limit_bytes=_vmem_limit_bytes(in_tile_bytes,
                                                   out_tile_bytes),
            ),
        )(x, w, b2)

    # torch .squeeze(): drop any size-1 dims of pooled_view.
    pooled = jnp.squeeze(pooled)
    aux = aux.reshape(B, V, F)
    return pooled, aux


# ---------------------------------------------------------------------------
# Self-test
# ---------------------------------------------------------------------------

if __name__ == "__main__":
    # Small, module-consistent shapes.
    B, V, C, D, H, W = 2, 4, 4, 4, 8, 8
    K = C * D * H * W          # 1024
    F = 128                    # backbone feature dim

    key = jax.random.PRNGKey(0)
    k_x, k_w, k_b = jax.random.split(key, 3)
    mvimages = jax.random.normal(k_x, (B, V, C, D, H, W), dtype=jnp.float32)
    weight = jax.random.normal(k_w, (K, F), dtype=jnp.float32) * (1.0 / K ** 0.5)
    bias = jax.random.normal(k_b, (F,), dtype=jnp.float32) * 0.01

    # Pure-JAX reference with the same bf16 MXU operands (f32 accumulate).
    xr = mvimages.reshape(B, V, K).astype(jnp.bfloat16)
    wr = weight.astype(jnp.bfloat16)
    aux_ref = jnp.maximum(
        jnp.einsum("bvk,kf->bvf", xr, wr,
                   preferred_element_type=jnp.float32) + bias, 0.0)
    pooled_ref = jnp.max(aux_ref, axis=1)

    # 1) Weight-resident fast path (default for these shapes).
    pooled, aux = view_max_aggregate(mvimages, weight, bias)
    jax.block_until_ready((pooled, aux))
    assert pooled.shape == (B, F) and aux.shape == (B, V, F)
    assert jnp.allclose(aux, aux_ref, atol=2e-2, rtol=2e-2)
    assert jnp.allclose(pooled, pooled_ref, atol=2e-2, rtol=2e-2)

    # 2) K-tiled reduction path (forced, to exercise the large-K code path).
    pooled2, aux2 = view_max_aggregate(mvimages, weight, bias,
                                       weight_resident_bytes=0, tk_cap=256)
    jax.block_until_ready((pooled2, aux2))
    assert jnp.allclose(aux2, aux_ref, atol=2e-2, rtol=2e-2)
    assert jnp.allclose(pooled2, pooled_ref, atol=2e-2, rtol=2e-2)

    print("KERNEL_OK")
</pallas_src>

<mosaic_0001>
module attributes {stable_mosaic.version = 11 : i64} {
  func.func @_mv_max_kernel_resident(%arg0: i32, %arg1: memref<8x1024xbf16, #tpu.memory_space<vmem>>, %arg2: memref<1024x128xbf16, #tpu.memory_space<vmem>>, %arg3: memref<1x128xf32, #tpu.memory_space<vmem>>, %arg4: memref<2x128xf32, #tpu.memory_space<vmem>>, %arg5: memref<8x128xf32, #tpu.memory_space<vmem>>) attributes {dimension_semantics = [#tpu.dimension_semantics<parallel>], iteration_bounds = array<i64: 1>, scalar_prefetch = 0 : i64, scratch_operands = 0 : i64, tpu.core_type = #tpu.core_type<tc>, window_params = [{transform_indices = @transform_0, window_bounds = array<i64: 8, 1024>}, {pipeline_mode = #tpu.pipeline_mode<synchronous>, transform_indices = @transform_1, window_bounds = array<i64: 1024, 128>}, {pipeline_mode = #tpu.pipeline_mode<synchronous>, transform_indices = @transform_2, window_bounds = array<i64: 1, 128>}, {transform_indices = @transform_3, window_bounds = array<i64: 2, 128>}, {transform_indices = @transform_4, window_bounds = array<i64: 8, 128>}]} {
    %c0 = arith.constant 0 : index
    %c0_0 = arith.constant 0 : index
    %0 = vector.load %arg1[%c0, %c0_0] : memref<8x1024xbf16, #tpu.memory_space<vmem>>, vector<8x1024xbf16>
    %c0_1 = arith.constant 0 : index
    %c0_2 = arith.constant 0 : index
    %1 = vector.load %arg2[%c0_1, %c0_2] : memref<1024x128xbf16, #tpu.memory_space<vmem>>, vector<1024x128xbf16>
    %cst = arith.constant dense<0.000000e+00> : vector<8x128xf32>
    %2 = tpu.matmul %0, %1, %cst {dimension_numbers = #tpu.dot_dimension_numbers<[1], [0], [0], [1], [0, 0, 1, 1], [], []>} : vector<8x1024xbf16>, vector<1024x128xbf16>, vector<8x128xf32> -> vector<8x128xf32>
    %c0_3 = arith.constant 0 : index
    %c0_4 = arith.constant 0 : index
    %3 = vector.load %arg3[%c0_3, %c0_4] : memref<1x128xf32, #tpu.memory_space<vmem>>, vector<1x128xf32>
    %4 = vector.broadcast %3 : vector<1x128xf32> to vector<8x128xf32>
    %5 = arith.addf %2, %4 : vector<8x128xf32>
    %cst_5 = arith.constant 0.000000e+00 : f32
    %6 = vector.broadcast %cst_5 : f32 to vector<8x128xf32>
    %7 = arith.maximumf %5, %6 : vector<8x128xf32>
    %c0_6 = arith.constant 0 : index
    %c0_7 = arith.constant 0 : index
    %8 = vector.load %arg5[%c0_6, %c0_7] : memref<8x128xf32, #tpu.memory_space<vmem>>, vector<8x128xf32>
    tpu.vector_store %arg5[%c0_6, %c0_7], %7 {strides = array<i32>} : memref<8x128xf32, #tpu.memory_space<vmem>>, vector<8x128xf32>,
    %c0_8 = arith.constant 0 : index
    %c0_9 = arith.constant 0 : index
    %9 = tpu.strided_load %arg5[%c0_8, %c0_9] {strides = array<i32: 4, 1>} : memref<8x128xf32, #tpu.memory_space<vmem>>, vector<2x128xf32>
    %c1 = arith.constant 1 : index
    %c0_10 = arith.constant 0 : index
    %10 = tpu.strided_load %arg5[%c1, %c0_10] {strides = array<i32: 4, 1>} : memref<8x128xf32, #tpu.memory_space<vmem>>, vector<2x128xf32>
    %11 = arith.maximumf %9, %10 : vector<2x128xf32>
    %c2 = arith.constant 2 : index
    %c0_11 = arith.constant 0 : index
    %12 = tpu.strided_load %arg5[%c2, %c0_11] {strides = array<i32: 4, 1>} : memref<8x128xf32, #tpu.memory_space<vmem>>, vector<2x128xf32>
    %13 = arith.maximumf %11, %12 : vector<2x128xf32>
    %c3 = arith.constant 3 : index
    %c0_12 = arith.constant 0 : index
    %14 = tpu.strided_load %arg5[%c3, %c0_12] {strides = array<i32: 4, 1>} : memref<8x128xf32, #tpu.memory_space<vmem>>, vector<2x128xf32>
    %15 = arith.maximumf %13, %14 : vector<2x128xf32>
    %c0_13 = arith.constant 0 : index
    %c0_14 = arith.constant 0 : index
    %16 = vector.load %arg4[%c0_13, %c0_14] : memref<2x128xf32, #tpu.memory_space<vmem>>, vector<2x128xf32>
    tpu.vector_store %arg4[%c0_13, %c0_14], %15 {strides = array<i32>} : memref<2x128xf32, #tpu.memory_space<vmem>>, vector<2x128xf32>,
    return
  }
  func.func @transform_0(%arg0: i32) -> (i32, i32) {
    %c0_i32 = arith.constant 0 : i32
    %c0_i32_0 = arith.constant 0 : i32
    return %arg0, %c0_i32 : i32, i32
  }
  func.func @transform_1(%arg0: i32) -> (i32, i32) {
    %c0_i32 = arith.constant 0 : i32
    %c0_i32_0 = arith.constant 0 : i32
    %c0_i32_1 = arith.constant 0 : i32
    return %c0_i32, %c0_i32_0 : i32, i32
  }
  func.func @transform_2(%arg0: i32) -> (i32, i32) {
    %c0_i32 = arith.constant 0 : i32
    %c0_i32_0 = arith.constant 0 : i32
    %c0_i32_1 = arith.constant 0 : i32
    return %c0_i32, %c0_i32_0 : i32, i32
  }
  func.func @transform_3(%arg0: i32) -> (i32, i32) {
    %c0_i32 = arith.constant 0 : i32
    %c0_i32_0 = arith.constant 0 : i32
    return %arg0, %c0_i32 : i32, i32
  }
  func.func @transform_4(%arg0: i32) -> (i32, i32) {
    %c0_i32 = arith.constant 0 : i32
    %c0_i32_0 = arith.constant 0 : i32
    return %arg0, %c0_i32 : i32, i32
  }
}

</mosaic_0001>

<bundles_post_ra>
// kernel: tpu_custom_call.1
= control target key start
LH: loop header
LB: loop body
LE: loop exit
PB: predicated region body
PF: predicated region fallthrough
CT: control target
= control target key end

     0   :  { %10 = vsyncpa [#allocation3], 0  ;;  %s1223_s0 = inlined_call_operand.hbm [shape: bf16[8,1024], index: 0, kind: input, shape index: {}]   ;;  %s1224_s1 = inlined_call_operand.hbm [shape: bf16[1024,128], index: 1, kind: input, shape index: {}]   ;;  %s1225_s2 = inlined_call_operand.vmem [shape: f32[1,128], index: 2, kind: input, shape index: {}]   ;;  %s1226_s3 = inlined_call_operand.hbm [shape: f32[2,128], index: 3, kind: output, shape index: {0}]   ;;  %s1227_s4 = inlined_call_operand.hbm [shape: f32[8,128], index: 4, kind: output, shape index: {1}]  }
   0x1   :  { %11 = vsyncpa [#allocation6], 0 }
   0x2   :  { %12 = vsyncpa [#allocation4], 0 }
   0x3   :  { %13 = vsyncpa [#allocation9], 0  ;;  %s1134_s15 = smov [#allocation2]   ;;  %s1135_s17 = smov [#allocation5]  }
   0x4   :  { %s20_s16 = sshll.u32 %s1134_s15, 4  ;;  %s29_s18 = sshll.u32 %s1135_s17, 4  ;;  %s21_s16 = int_to_ptr.vmem [resolvable:$true] %s20_s16  ;;  %s1165_s18 = int_to_ptr.vmem [resolvable:$true] %s29_s18 }
   0x5   :  { %s1038_s21 = scalar_lea.hbm %s1223_s0, 512 }
   0x6   :  { %p1039_p0 = scmp.ne.s32.totalorder %s1223_s0, %s1038_s21  ;;  %p1042_p1 = scmp.lt.u32.totalorder %s1038_s21, %s1223_s0 }
   0x8   :  { %p1044_p2 = pnand %p1042_p1, %p1039_p0 }
   0xa   :  { %1047 = shalt.err (!%p1044_p2)
}
   0xb   :  { %s1048_s26 = scalar_lea.vmem %s21_s16, 512  ;;  %p1053_p4 = scmp.lt.s32.totalorder %s21_s16, %s21_s16 }
   0xc   :  { %p1049_p3 = scmp.ne.s32.totalorder %s21_s16, %s1048_s26  ;;  %p1054_p5 = scmp.lt.s32.totalorder %s1048_s26, %s1048_s26 }
   0xe   :  { %p1055_p6 = por %p1054_p5, %p1053_p4 }
  0x10   :  { %p1056_p7 = pnand %p1055_p6, %p1049_p3 }
  0x12   :  { %1059 = shalt.err (!%p1056_p7)
}
  0x13   :  { %23 = dma.hbm_to_vmem [thread:$0]  %s1223_s0, 512, %s21_s16, [#allocation3]  }
  0x14   :  { %s1060_s5 = scalar_lea.hbm %s1224_s1, 8192 }
  0x15   :  { %p1061_p8 = scmp.ne.s32.totalorder %s1224_s1, %s1060_s5  ;;  %p1064_p9 = scmp.lt.u32.totalorder %s1060_s5, %s1224_s1 }
  0x17   :  { %p1066_p10 = pnand %p1064_p9, %p1061_p8 }
  0x19   :  { %1069 = shalt.err (!%p1066_p10)
}
  0x1a   :  { %s1070_s10 = scalar_lea.vmem %s1165_s18, 8192  ;;  %p1075_p12 = scmp.lt.s32.totalorder %s1165_s18, %s1165_s18 }
  0x1b   :  { %p1071_p11 = scmp.ne.s32.totalorder %s1165_s18, %s1070_s10  ;;  %p1076_p13 = scmp.lt.s32.totalorder %s1070_s10, %s1070_s10 }
  0x1d   :  { %p1077_p0 = por %p1076_p13, %p1075_p12 }
  0x1f   :  { %p1078_p1 = pnand %p1077_p0, %p1071_p11 }
  0x21   :  { %1081 = shalt.err (!%p1078_p1)
}
  0x22   :  { %s1136_s0 = smov 64   ;;  %s1137_s11 = smov 4  }
  0x23   :  { %35 = dma.hbm_to_vmem [thread:$0]  %s1224_s1, 8192, %s1165_s18, [#allocation6], %s1136_s0, %s1136_s0, %s1137_s11  }
  0x24   :  { %1126 = dma.done.wait [#allocation3], 512  }
  0x25   :  { %1127 = vsyncadd [#allocation3], 4294966784 }
  0x26   :  { %1128 = dma.done.wait [#allocation6], 8192  }
  0x27   :  { %1129 = vsyncadd [#allocation6], 4294959104  ;;  %v966_v0 = vld [vmem:[#allocation5 + $0x40] sm:$0xff]   ;;  %v970_v4 = vld [vmem:[#allocation5 + $0x48] sm:$0xff]  }
  0x28   :  { %v967_v1 = vld [vmem:[#allocation5 + $0xc0] sm:$0xff]   ;;  %872 = vmatprep.subr.bf16.mxu0 %v966_v0  ;;  %v971_v5 = vld [vmem:[#allocation5 + $0xc8] sm:$0xff]   ;;  %v974_v8 = vld [vmem:[#allocation5 + $0x50] sm:$0xff]  }
  0x29   :  { %v968_v2 = vld [vmem:[#allocation5] sm:$0xff]   ;;  %894 = vmatprep.subr.bf16.mxu1 %v967_v1  ;;  %v972_v6 = vld [vmem:[#allocation5 + $0x8] sm:$0xff]   ;;  %v975_v9 = vld [vmem:[#allocation5 + $0xd0] sm:$0xff]  }
  0x2a   :  { %v969_v3 = vld [vmem:[#allocation5 + $0x80] sm:$0xff]   ;;  %873 = vmatpush3.bf16.msra.mxu0 %v968_v2  ;;  %v973_v7 = vld [vmem:[#allocation5 + $0x88] sm:$0xff]   ;;  %v976_v10 = vld [vmem:[#allocation5 + $0x10] sm:$0xff]  }
  0x2b   :  { %895 = vmatpush3.bf16.msra.mxu1 %v969_v3  ;;  %874 = vmatprep.subr.bf16.mxu0 %v970_v4  ;;  %v977_v11 = vld [vmem:[#allocation5 + $0x90] sm:$0xff]   ;;  %v978_v12 = vld [vmem:[#allocation5 + $0x58] sm:$0xff]   ;;  %v982_v16 = vld [vmem:[#allocation5 + $0x60] sm:$0xff]  }
  0x2c   :  { %896 = vmatprep.subr.bf16.mxu1 %v971_v5  ;;  %v979_v13 = vld [vmem:[#allocation5 + $0xd8] sm:$0xff]   ;;  %v983_v17 = vld [vmem:[#allocation5 + $0xe0] sm:$0xff]   ;;  %v986_v20 = vld [vmem:[#allocation5 + $0x68] sm:$0xff]  }
  0x2d   :  { %v980_v14 = vld [vmem:[#allocation5 + $0x18] sm:$0xff]   ;;  %v984_v18 = vld [vmem:[#allocation5 + $0x20] sm:$0xff]   ;;  %v987_v21 = vld [vmem:[#allocation5 + $0xe8] sm:$0xff]  }
  0x2e   :  { %875 = vmatpush3.bf16.msra.mxu0 %v972_v6  ;;  %v981_v15 = vld [vmem:[#allocation5 + $0x98] sm:$0xff]   ;;  %v985_v19 = vld [vmem:[#allocation5 + $0xa0] sm:$0xff]   ;;  %v988_v22 = vld [vmem:[#allocation5 + $0x28] sm:$0xff]  }
  0x2f   :  { %897 = vmatpush3.bf16.msra.mxu1 %v973_v7  ;;  %876 = vmatprep.subr.bf16.mxu0 %v974_v8  ;;  %v989_v23 = vld [vmem:[#allocation5 + $0xa8] sm:$0xff]   ;;  %v990_v24 = vld [vmem:[#allocation5 + $0x70] sm:$0xff]   ;;  %v994_v28 = vld [vmem:[#allocation5 + $0x78] sm:$0xff]  }
  0x30   :  { %898 = vmatprep.subr.bf16.mxu1 %v975_v9  ;;  %v991_v25 = vld [vmem:[#allocation5 + $0xf0] sm:$0xff]   ;;  %v995_v29 = vld [vmem:[#allocation5 + $0xf8] sm:$0xff]   ;;  %v45_v32 = vld [vmem:[#allocation2] sm:$0xff] }
  0x31   :  { %v992_v26 = vld [vmem:[#allocation5 + $0x30] sm:$0xff]   ;;  %v996_v30 = vld [vmem:[#allocation5 + $0x38] sm:$0xff]   ;;  %v46_v33 = vld [vmem:[#allocation2 + $0x8] sm:$0xff]  ;;  %v800_v34 = vcombine.low %v45_v32, %v45_v32  ;;  %v801_v35 = vcombine.high %v45_v32, %v45_v32 }
  0x32   :  { %877 = vmatpush3.bf16.msra.mxu0 %v976_v10  ;;  %v993_v27 = vld [vmem:[#allocation5 + $0xb0] sm:$0xff]   ;;  %v997_v31 = vld [vmem:[#allocation5 + $0xb8] sm:$0xff]   ;;  %v802_v36 = vcombine.low %v46_v33, %v46_v33  ;;  %v803_v37 = vcombine.high %v46_v33, %v46_v33  ;;  %v1002_v38 = vld [vmem:[#allocation5 + $0x140] sm:$0xff]  }
  0x33   :  { %899 = vmatpush3.bf16.msra.mxu1 %v977_v11  ;;  %878 = vmatprep.subr.bf16.mxu0 %v978_v12  ;;  %v1003_v39 = vld [vmem:[#allocation5 + $0x1c0] sm:$0xff]   ;;  %v1006_v42 = vld [vmem:[#allocation5 + $0x148] sm:$0xff]   ;;  %v1010_v46 = vld [vmem:[#allocation5 + $0x150] sm:$0xff]  }
  0x34   :  { %900 = vmatprep.subr.bf16.mxu1 %v979_v13  ;;  %628 = vmatprep.mubr.bf16.mxu0 %v801_v35  ;;  %v1004_v40 = vld [vmem:[#allocation5 + $0x100] sm:$0xff]   ;;  %v1007_v43 = vld [vmem:[#allocation5 + $0x1c8] sm:$0xff]   ;;  %v1011_v47 = vld [vmem:[#allocation5 + $0x1d0] sm:$0xff]  }
  0x35   :  { %668 = vmatprep.mubr.bf16.mxu1 %v803_v37  ;;  %v1005_v41 = vld [vmem:[#allocation5 + $0x180] sm:$0xff]   ;;  %v1008_v44 = vld [vmem:[#allocation5 + $0x108] sm:$0xff]   ;;  %v1012_v48 = vld [vmem:[#allocation5 + $0x110] sm:$0xff]  }
  0x36   :  { %879 = vmatpush3.bf16.msra.mxu0 %v980_v14  ;;  %v1009_v45 = vld [vmem:[#allocation5 + $0x188] sm:$0xff]   ;;  %v1013_v49 = vld [vmem:[#allocation5 + $0x190] sm:$0xff]   ;;  %v1014_v50 = vld [vmem:[#allocation5 + $0x158] sm:$0xff]  }
  0x37   :  { %901 = vmatpush3.bf16.msra.mxu1 %v981_v15  ;;  %880 = vmatprep.subr.bf16.mxu0 %v982_v16  ;;  %v1015_v51 = vld [vmem:[#allocation5 + $0x1d8] sm:$0xff]   ;;  %v1018_v54 = vld [vmem:[#allocation5 + $0x160] sm:$0xff]   ;;  %v1022_v58 = vld [vmem:[#allocation5 + $0x168] sm:$0xff]  }
  0x38   :  { %902 = vmatprep.subr.bf16.mxu1 %v983_v17  ;;  %v1016_v52 = vld [vmem:[#allocation5 + $0x118] sm:$0xff]   ;;  %v1019_v55 = vld [vmem:[#allocation5 + $0x1e0] sm:$0xff]   ;;  %v1023_v59 = vld [vmem:[#allocation5 + $0x1e8] sm:$0xff]  }
  0x39   :  { %v1017_v53 = vld [vmem:[#allocation5 + $0x198] sm:$0xff]   ;;  %v1020_v56 = vld [vmem:[#allocation5 + $0x120] sm:$0xff]   ;;  %v1024_v60 = vld [vmem:[#allocation5 + $0x128] sm:$0xff]  }
  0x3a   :  { %881 = vmatpush3.bf16.msra.mxu0 %v984_v18  ;;  %v1021_v57 = vld [vmem:[#allocation5 + $0x1a0] sm:$0xff]   ;;  %v1025_v61 = vld [vmem:[#allocation5 + $0x1a8] sm:$0xff]   ;;  %v1026_v62 = vld [vmem:[#allocation5 + $0x170] sm:$0xff]  }
  0x3b   :  { %903 = vmatpush3.bf16.msra.mxu1 %v985_v19  ;;  %882 = vmatprep.subr.bf16.mxu0 %v986_v20  ;;  %v1027_v63 = vld [vmem:[#allocation5 + $0x1f0] sm:$0xff]   ;;  %v1030_v2 = vld [vmem:[#allocation5 + $0x178] sm:$0xff]   ;;  %v799_v14 = vld [vmem:[%s1225_s2] ss:$0 sm:$0xff]  ;;  %s1138_s2 = smov [#allocation8]  }
  0x3c   :  { %904 = vmatprep.subr.bf16.mxu1 %v987_v21  ;;  %v1028_v0 = vld [vmem:[#allocation5 + $0x130] sm:$0xff]   ;;  %v1031_v3 = vld [vmem:[#allocation5 + $0x1f8] sm:$0xff]   ;;  %s785_s15 = sshll.u32 %s1138_s2, 4  ;;  %s786_s15 = int_to_ptr.vmem [resolvable:$true] %s785_s15 }
  0x3d   :  { %v1029_v1 = vld [vmem:[#allocation5 + $0x1b0] sm:$0xff]   ;;  %v1032_v4 = vld [vmem:[#allocation5 + $0x138] sm:$0xff]   ;;  %s1082_s16 = scalar_lea.vmem %s786_s15, 128  ;;  %p1087_p3 = scmp.lt.s32.totalorder %s786_s15, %s786_s15 }
  0x3e   :  { %883 = vmatpush3.bf16.msra.mxu0 %v988_v22  ;;  %v1033_v5 = vld [vmem:[#allocation5 + $0x1b8] sm:$0xff]   ;;  %v47_v6 = vld [vmem:[#allocation2 + $0x10] sm:$0xff]  ;;  %p1083_p2 = scmp.ne.s32.totalorder %s786_s15, %s1082_s16  ;;  %p1088_p4 = scmp.lt.s32.totalorder %s1082_s16, %s1082_s16 }
  0x3f   :  { %905 = vmatpush3.bf16.msra.mxu1 %v989_v23  ;;  %884 = vmatprep.subr.bf16.mxu0 %v990_v24  ;;  %v804_v7 = vcombine.low %v47_v6, %v47_v6  ;;  %v805_v8 = vcombine.high %v47_v6, %v47_v6  ;;  %v48_v9 = vld [vmem:[#allocation2 + $0x18] sm:$0xff] }
  0x40   :  { %906 = vmatprep.subr.bf16.mxu1 %v991_v25  ;;  %v806_v10 = vcombine.low %v48_v9, %v48_v9  ;;  %v807_v11 = vcombine.high %v48_v9, %v48_v9  ;;  %p1089_p5 = por %p1088_p4, %p1087_p3 }
  0x42   :  { %885 = vmatpush3.bf16.msra.mxu0 %v992_v26  ;;  %p1090_p6 = pnand %p1089_p5, %p1083_p2 }
  0x43   :  { %907 = vmatpush3.bf16.msra.mxu1 %v993_v27  ;;  %886 = vmatprep.subr.bf16.mxu0 %v994_v28 }
  0x44   :  { %908 = vmatprep.subr.bf16.mxu1 %v995_v29 }
  0x46   :  { %887 = vmatpush3.bf16.msra.mxu0 %v996_v30 }
  0x47   :  { %909 = vmatpush3.bf16.msra.mxu1 %v997_v31  ;;  %916 = vmatprep.subr.bf16.mxu0 %v1002_v38 }
  0x48   :  { %938 = vmatprep.subr.bf16.mxu1 %v1003_v39 }
  0x49   :  { %629 = vmatmul.mubr.bf16.vlgmr.msra.gmra.mrb[0].mxu0 %v800_v34 }
  0x4a   :  { %669 = vmatmul.mubr.bf16.vlgmr.msra.gmra.mrb[0].mxu1 %v802_v36  ;;  %917 = vmatpush3.bf16.msra.mxu0 %v1004_v40 }
  0x4b   :  { %939 = vmatpush3.bf16.msra.mxu1 %v1005_v41  ;;  %918 = vmatprep.subr.bf16.mxu0 %v1006_v42 }
  0x4c   :  { %940 = vmatprep.subr.bf16.mxu1 %v1007_v43  ;;  %708 = vmatprep.mubr.bf16.mxu0 %v805_v8 }
  0x4d   :  { %748 = vmatprep.mubr.bf16.mxu1 %v807_v11 }
  0x4e   :  { %919 = vmatpush3.bf16.msra.mxu0 %v1008_v44 }
  0x4f   :  { %941 = vmatpush3.bf16.msra.mxu1 %v1009_v45  ;;  %920 = vmatprep.subr.bf16.mxu0 %v1010_v46 }
  0x50   :  { %942 = vmatprep.subr.bf16.mxu1 %v1011_v47 }
  0x52   :  { %921 = vmatpush3.bf16.msra.mxu0 %v1012_v48 }
  0x53   :  { %943 = vmatpush3.bf16.msra.mxu1 %v1013_v49  ;;  %922 = vmatprep.subr.bf16.mxu0 %v1014_v50 }
  0x54   :  { %944 = vmatprep.subr.bf16.mxu1 %v1015_v51 }
  0x56   :  { %923 = vmatpush3.bf16.msra.mxu0 %v1016_v52 }
  0x57   :  { %945 = vmatpush3.bf16.msra.mxu1 %v1017_v53  ;;  %924 = vmatprep.subr.bf16.mxu0 %v1018_v54 }
  0x58   :  { %946 = vmatprep.subr.bf16.mxu1 %v1019_v55 }
  0x5a   :  { %925 = vmatpush3.bf16.msra.mxu0 %v1020_v56 }
  0x5b   :  { %947 = vmatpush3.bf16.msra.mxu1 %v1021_v57  ;;  %926 = vmatprep.subr.bf16.mxu0 %v1022_v58 }
  0x5c   :  { %948 = vmatprep.subr.bf16.mxu1 %v1023_v59 }
  0x5e   :  { %927 = vmatpush3.bf16.msra.mxu0 %v1024_v60 }
  0x5f   :  { %949 = vmatpush3.bf16.msra.mxu1 %v1025_v61  ;;  %928 = vmatprep.subr.bf16.mxu0 %v1026_v62 }
  0x60   :  { %950 = vmatprep.subr.bf16.mxu1 %v1027_v63 }
  0x62   :  { %929 = vmatpush3.bf16.msra.mxu0 %v1028_v0 }
  0x63   :  { %951 = vmatpush3.bf16.msra.mxu1 %v1029_v1  ;;  %930 = vmatprep.subr.bf16.mxu0 %v1030_v2 }
  0x64   :  { %952 = vmatprep.subr.bf16.mxu1 %v1031_v3 }
  0x66   :  { %931 = vmatpush3.bf16.msra.mxu0 %v1032_v4 }
  0x67   :  { %953 = vmatpush3.bf16.msra.mxu1 %v1033_v5 }
  0x69   :  { %709 = vmatmul.mubr.bf16.vlgmr.msra.gmra.mrb[4].mxu0 %v804_v7 }
  0x6a   :  { %749 = vmatmul.mubr.bf16.vlgmr.msra.gmra.mrb[4].mxu1 %v806_v10 }
 0x11c   :  { %v888_v12 = vpop.f32.mrb[0].mxu0 }
 0x11d   :  { %v910_v13 = vpop.f32.mrb[0].mxu1  ;;  %v889_v15 = vpop.f32.mrb[1].mxu0 }
 0x11e   :  { %v911_v16 = vpop.f32.mrb[1].mxu1  ;;  %v890_v17 = vadd.f32 %v889_v15, %v888_v12  ;;  %v891_v19 = vpop.f32.mrb[2].mxu0 }
 0x11f   :  { %v912_v18 = vadd.f32 %v911_v16, %v910_v13  ;;  %v913_v20 = vpop.f32.mrb[2].mxu1  ;;  %v892_v21 = vpop.f32.mrb[3].mxu0 }
 0x120   :  { %v914_v22 = vpop.f32.mrb[3].mxu1  ;;  %v631_v23 = vadd.f32 %v890_v17, %v799_v14 }
 0x122   :  { %v671_v24 = vadd.f32 %v912_v18, %v631_v23 }
 0x13c   :  { %v932_v25 = vpop.f32.mrb[4].mxu0 }
 0x13d   :  { %v954_v26 = vpop.f32.mrb[4].mxu1  ;;  %v933_v27 = vpop.f32.mrb[5].mxu0 }
 0x13e   :  { %v955_v28 = vpop.f32.mrb[5].mxu1  ;;  %v934_v29 = vadd.f32 %v933_v27, %v932_v25  ;;  %v935_v31 = vpop.f32.mrb[6].mxu0 }
 0x13f   :  { %v956_v30 = vadd.f32 %v955_v28, %v954_v26  ;;  %v957_v32 = vpop.f32.mrb[6].mxu1  ;;  %v936_v33 = vpop.f32.mrb[7].mxu0 }
 0x140   :  { %v958_v34 = vpop.f32.mrb[7].mxu1  ;;  %v711_v35 = vadd.f32 %v934_v29, %v671_v24 }
 0x142   :  { %v751_v36 = vadd.f32 %v956_v30, %v711_v35 }
 0x144   :  { %v756_v37 = vmax.f32 %v751_v36, 0.0 }
 0x146   :  { %757 = vst [vmem:[#allocation8] sm:$0xff] %v756_v37 }
 0x147   :  { %1093 = shalt.err (!%p1090_p6)
}
 0x148   :  { %s1094_s19 = scalar_lea.hbm %s1227_s4, 128 }
 0x149   :  { %p1095_p7 = scmp.ne.s32.totalorder %s1227_s4, %s1094_s19  ;;  %p1098_p8 = scmp.lt.u32.totalorder %s1094_s19, %s1227_s4 }
 0x14b   :  { %p1100_p9 = pnand %p1098_p8, %p1095_p7 }
 0x14d   :  { %1103 = shalt.err (!%p1100_p9)
}
 0x14e   :  { %788 = dma.vmem_to_hbm [thread:$0]  %s786_s15, 128, %s1227_s4, [#allocation9]   ;;  %v758_v38 = vld [vmem:[#allocation8] ss:$4 sm:$0x3] }
 0x14f   :  { %v760_v39 = vld [vmem:[#allocation8 + $0x1] ss:$4 sm:$0x3]  ;;  %v763_v41 = vld [vmem:[#allocation8 + $0x2] ss:$4 sm:$0x3] }
 0x150   :  { %v761_v40 = vmax.f32 %v758_v38, %v760_v39  ;;  %s1139_s26 = smov [#allocation7]   ;;  %v766_v43 = vld [vmem:[#allocation8 + $0x3] ss:$4 sm:$0x3] }
 0x151   :  { %s775_s27 = sshll.u32 %s1139_s26, 4  ;;  %s776_s27 = int_to_ptr.vmem [resolvable:$true] %s775_s27 }
 0x152   :  { %v764_v42 = vmax.f32 %v761_v40, %v763_v41  ;;  %s1104_s28 = scalar_lea.vmem %s776_s27, 32  ;;  %p1109_p11 = scmp.lt.s32.totalorder %s776_s27, %s776_s27 }
 0x153   :  { %p1105_p10 = scmp.ne.s32.totalorder %s776_s27, %s1104_s28  ;;  %p1110_p12 = scmp.lt.s32.totalorder %s1104_s28, %s1104_s28 }
 0x154   :  { %v767_v44 = vmax.f32 %v764_v42, %v766_v43 }
 0x155   :  { %p1111_p13 = por %p1110_p12, %p1109_p11 }
 0x156   :  { %768 = vst [vmem:[#allocation7] sm:$0x3] %v767_v44 }
 0x157   :  { %p1112_p0 = pnand %p1111_p13, %p1105_p10 }
 0x159   :  { %1115 = shalt.err (!%p1112_p0)
}
 0x15a   :  { %s1116_s30 = scalar_lea.hbm %s1226_s3, 32 }
 0x15b   :  { %p1117_p1 = scmp.ne.s32.totalorder %s1226_s3, %s1116_s30  ;;  %p1120_p2 = scmp.lt.u32.totalorder %s1116_s30, %s1226_s3 }
 0x15d   :  { %p1122_p3 = pnand %p1120_p2, %p1117_p1 }
 0x15f   :  { %1125 = shalt.err (!%p1122_p3)
}
 0x160   :  { %778 = dma.vmem_to_hbm [thread:$0]  %s776_s27, 32, %s1226_s3, [#allocation4]  }
 0x161   :  { %1130 = dma.done.wait [#allocation4], 32  }
 0x162   :  { %1131 = vsyncadd [#allocation4], 4294967264 }
 0x163   :  { %1132 = dma.done.wait [#allocation9], 128  }
 0x164   :  { %1133 = vsyncadd [#allocation9], 4294967168 }
 0x165   :  { %795 = vsyncpa [#allocation3], 1 }
 0x166   :  { %796 = vsyncpa [#allocation6], 1 }
 0x167   :  { %797 = vsyncpa [#allocation4], 1 }
 0x168   :  { %798 = vsyncpa [#allocation9], 1 }

</bundles_post_ra>
